<compile_context>
chip_gen: v7x
topology: tpu7x:2x2x1
jax: 0.10.0
libtpu: 0.0.40
codegen_flags: <defaults>
</compile_context>

<pallas_src>
import functools
import math

import jax
import jax.numpy as jnp
from jax.experimental import pallas as pl
from jax.experimental.pallas import tpu as pltpu


# ----------------------------------------------------------------------------
# helpers
# ----------------------------------------------------------------------------
def _round_up(x, m):
    return ((x + m - 1) // m) * m


def _vmem_capacity_bytes():
    try:
        return int(pltpu.get_tpu_info().vmem_capacity_bytes)
    except Exception:
        return 64 << 20  # conservative fallback (v7x-sized)


def _vmem_limit(n_f32_words, cap_bytes):
    # 2x for default double buffering + 4 MiB headroom, capped at ~85% of this
    # generation's physical VMEM (64 MiB v7x, 128 MiB v5e/v6e).
    return int(min(int(0.85 * cap_bytes), 2 * 4 * int(n_f32_words) + (4 << 20)))


# ----------------------------------------------------------------------------
# beta = softmax(topic_vectors @ word_vectors, axis=1)  -- batch independent,
# V-tiled: pass 1 = online row max/sum over vocab tiles, pass 2 = normalize.
# ----------------------------------------------------------------------------
def _beta_stats_kernel(tv_ref, wv_ref, m_ref, s_ref, m_sc, s_sc):
    v = pl.program_id(0)

    @pl.when(v == 0)
    def _():
        m_sc[...] = jnp.full_like(m_sc, -jnp.inf)
        s_sc[...] = jnp.zeros_like(s_sc)

    logits = jnp.dot(tv_ref[...], wv_ref[...],
                     preferred_element_type=jnp.float32)            # (T, VT)
    m_new = jnp.maximum(m_sc[...], jnp.max(logits, axis=1, keepdims=True))
    s_sc[...] = (s_sc[...] * jnp.exp(m_sc[...] - m_new)
                 + jnp.sum(jnp.exp(logits - m_new), axis=1, keepdims=True))
    m_sc[...] = m_new

    @pl.when(v == pl.num_programs(0) - 1)
    def _():
        m_ref[...] = m_sc[...]
        s_ref[...] = s_sc[...]


def _beta_kernel(tv_ref, wv_ref, m_ref, s_ref, beta_ref):
    logits = jnp.dot(tv_ref[...], wv_ref[...],
                     preferred_element_type=jnp.float32)            # (T, VT)
    # exact normalization (free accuracy: only a (T,1) reciprocal)
    beta_ref[0] = jnp.exp(logits - m_ref[...]) / s_ref[...]


def compute_beta(tv, wv, v_tile, vmem_cap):
    """Returns beta laid out as (nv, T, v_tile) for resident/streamed decoder use."""
    T, E = tv.shape
    V = wv.shape[1]
    assert V % v_tile == 0
    nv = V // v_tile

    tv_spec = pl.BlockSpec((T, E), lambda v: (0, 0))
    wv_spec = pl.BlockSpec((E, v_tile), lambda v: (0, v))
    col_spec = pl.BlockSpec((T, 1), lambda v: (0, 0))

    stats_words = T * E + E * v_tile + T * v_tile + 4 * T
    m, s = pl.pallas_call(
        _beta_stats_kernel,
        out_shape=(jax.ShapeDtypeStruct((T, 1), jnp.float32),
                   jax.ShapeDtypeStruct((T, 1), jnp.float32)),
        grid_spec=pltpu.PrefetchScalarGridSpec(
            num_scalar_prefetch=0, grid=(nv,),
            in_specs=[tv_spec, wv_spec],
            out_specs=(col_spec, col_spec),
            scratch_shapes=[pltpu.VMEM((T, 1), jnp.float32),
                            pltpu.VMEM((T, 1), jnp.float32)]),
        compiler_params=pltpu.CompilerParams(
            dimension_semantics=("arbitrary",),
            vmem_limit_bytes=_vmem_limit(stats_words, vmem_cap)),
    )(tv, wv)

    beta_words = T * E + E * v_tile + 2 * T + T * v_tile
    beta = pl.pallas_call(
        _beta_kernel,
        out_shape=jax.ShapeDtypeStruct((nv, T, v_tile), jnp.float32),
        grid_spec=pltpu.PrefetchScalarGridSpec(
            num_scalar_prefetch=0, grid=(nv,),
            in_specs=[tv_spec, wv_spec, col_spec, col_spec],
            out_specs=pl.BlockSpec((1, T, v_tile), lambda v: (v, 0, 0))),
        compiler_params=pltpu.CompilerParams(
            dimension_semantics=("parallel",),
            vmem_limit_bytes=_vmem_limit(beta_words, vmem_cap)),
    )(tv, wv, m, s)
    return beta


# ----------------------------------------------------------------------------
# encoder: x -> mlp(tanh,tanh) -> mean/logvar -> pre = gsm(mean) -> p = softmax
# grid = (batch_tiles, vocab_tiles); vocab axis reduces x @ w1 into a VMEM acc.
# Also emits per-batch-tile KLD partial sums (lane-dense (1,1,128) blocks).
# ----------------------------------------------------------------------------
def _encoder_kernel(batch_size, bt,
                    x_ref, w1_ref, b1_ref, w2_ref, b2_ref,
                    wm_ref, bm_ref, wl_ref, bl_ref, wg_ref, bg_ref,
                    mean_ref, pre_ref, p_ref, kld_ref,
                    h1_acc):
    i = pl.program_id(0)
    v = pl.program_id(1)
    nv = pl.num_programs(1)

    @pl.when(v == 0)
    def _():
        h1_acc[...] = jnp.zeros_like(h1_acc)

    # vocab-axis reduction of x @ w1 (w1 may be streamed as bf16: cast in-kernel)
    h1_acc[...] += jnp.dot(x_ref[...], w1_ref[...].astype(jnp.float32),
                           preferred_element_type=jnp.float32)

    @pl.when(v == nv - 1)
    def _():
        h1 = jnp.tanh(h1_acc[...] + b1_ref[...])                                  # (BT, H)
        h2 = jnp.tanh(jnp.dot(h1, w2_ref[...],
                              preferred_element_type=jnp.float32) + b2_ref[...])  # (BT, H)

        mean = jnp.dot(h2, wm_ref[...],
                       preferred_element_type=jnp.float32) + bm_ref[...]          # (BT, Z)
        logvar = jnp.dot(h2, wl_ref[...],
                         preferred_element_type=jnp.float32) + bl_ref[...]        # (BT, Z)
        var = jnp.exp(logvar)

        pre = jnp.dot(mean, wg_ref[...],
                      preferred_element_type=jnp.float32) + bg_ref[...]           # (BT, T)
        pe = jnp.exp(pre - jnp.max(pre, axis=1, keepdims=True))
        p = pe / jnp.sum(pe, axis=1, keepdims=True)     # exact normalization

        # NOTE: mean/pre/p last dims (Z, T) are < 128 -> masked partial stores;
        # accepted, they are tiny compared with the V-sized traffic.
        mean_ref[...] = mean
        pre_ref[...] = pre
        p_ref[...] = p

        # KLD vs the N(0, I) prior, masked so zero-padded batch rows contribute 0.
        z_dim = mean.shape[1]
        row = i * bt + jax.lax.broadcasted_iota(jnp.int32, (mean.shape[0], 1), 0)
        rmask = (row < batch_size).astype(jnp.float32)
        kld_row = 0.5 * (jnp.sum(var + mean * mean - logvar, axis=1, keepdims=True)
                         - jnp.float32(z_dim))
        kld_ref[...] = jnp.full(kld_ref.shape, jnp.sum(kld_row * rmask), jnp.float32)


# ----------------------------------------------------------------------------
# decoder: recon = p @ beta (per vocab tile) + NL partial accumulation.
# beta arrives as (nv, T, v_tile): fully VMEM-resident when it fits (constant
# index_map => one DMA for the whole grid), else streamed tile-by-tile.
# ----------------------------------------------------------------------------
def _decoder_kernel(batch_size, bt, beta_resident,
                    x_ref, p_ref, beta_ref,
                    recon_ref, nl_ref,
                    nl_acc):
    i = pl.program_id(0)
    v = pl.program_id(1)
    nv = pl.num_programs(1)

    @pl.when(v == 0)
    def _():
        nl_acc[...] = jnp.zeros_like(nl_acc)

    if beta_resident:
        beta = beta_ref[v]      # dynamic first-axis index into the resident block
    else:
        beta = beta_ref[0]      # streamed (1, T, VT) tile

    recon = jnp.dot(p_ref[...], beta,
                    preferred_element_type=jnp.float32)                 # (BT, VT)
    recon_ref[...] = recon
    nl_acc[...] += -jnp.sum(x_ref[...] * jnp.log(recon + 1e-10),
                            axis=1, keepdims=True)                      # (BT, 1)

    @pl.when(v == nv - 1)
    def _():
        row = i * bt + jax.lax.broadcasted_iota(jnp.int32, (nl_acc.shape[0], 1), 0)
        rmask = (row < batch_size).astype(jnp.float32)
        nl_ref[...] = jnp.full(nl_ref.shape, jnp.sum(nl_acc[...] * rmask), jnp.float32)


# ----------------------------------------------------------------------------
# wrapper
# ----------------------------------------------------------------------------
def gsm_forward(x, params, vi_hidden, *, batch_tile=None, v_tile=None,
                w1_stream_dtype=jnp.float32):
    """Eval-mode forward: returns (posterior_mean, pre_softmax, p, recon, (loss, NL, KLD))."""
    x = x.astype(jnp.float32)
    B, V = x.shape
    H = params["w1"].shape[1]
    Z = params["wm"].shape[1]
    T = params["wg"].shape[1]
    assert Z == vi_hidden

    vmem_cap = _vmem_capacity_bytes()

    # ---- tiling ----
    if batch_tile is None:
        batch_tile = 256                     # fills the 256-wide MXU M dim on v6e/v7x
    if B > 8:
        # keep nb >= 2 so the "parallel" batch axis can shard across both v7x cores
        bt = _round_up(min(batch_tile, max(8, _round_up(-(-B // 2), 8))), 8)
    else:
        bt = _round_up(max(B, 1), 8)
    nb = -(-B // bt)
    b_pad = nb * bt

    if v_tile is None:
        v_tile = next((c for c in (2048, 1024, 512, 256, 128) if V % c == 0), V)
    assert V % v_tile == 0 and (v_tile % 128 == 0 or v_tile == V)
    nv = V // v_tile

    # pad only when needed (pick bt dividing B to skip this extra HBM pass)
    x_p = x if b_pad == B else jnp.pad(x, ((0, b_pad - B), (0, 0)))

    # optionally stream the largest weight (w1, V x H) as bf16 (cast back in-kernel)
    w1 = params["w1"].astype(w1_stream_dtype)

    # ---- beta, computed once (batch independent), V-tiled ----
    beta = compute_beta(params["tv"], params["wv"], v_tile, vmem_cap)  # (nv, T, v_tile)
    beta_resident = (2 * T * V * 4) <= min(vmem_cap // 4, 16 << 20)

    # ---- encoder pallas_call ----
    w_const = lambda shape: pl.BlockSpec(shape, lambda i, v: (0, 0))
    enc_in_specs = [
        pl.BlockSpec((bt, v_tile), lambda i, v: (i, v)),     # x
        pl.BlockSpec((v_tile, H), lambda i, v: (v, 0)),      # w1 (maybe bf16)
        w_const((1, H)),                                     # b1
        w_const((H, H)), w_const((1, H)),                    # w2, b2
        w_const((H, Z)), w_const((1, Z)),                    # wm, bm
        w_const((H, Z)), w_const((1, Z)),                    # wl, bl
        w_const((Z, T)), w_const((1, T)),                    # wg, bg
    ]
    enc_out_specs = (
        pl.BlockSpec((bt, Z), lambda i, v: (i, 0)),          # mean
        pl.BlockSpec((bt, T), lambda i, v: (i, 0)),          # pre
        pl.BlockSpec((bt, T), lambda i, v: (i, 0)),          # p
        pl.BlockSpec((1, 1, 128), lambda i, v: (i, 0, 0)),   # KLD partial (lane dense)
    )
    enc_out_shape = (
        jax.ShapeDtypeStruct((b_pad, Z), jnp.float32),
        jax.ShapeDtypeStruct((b_pad, T), jnp.float32),
        jax.ShapeDtypeStruct((b_pad, T), jnp.float32),
        jax.ShapeDtypeStruct((nb, 1, 128), jnp.float32),
    )
    enc_words = (bt * v_tile + v_tile * H                       # streamed tiles
                 + H * H + 2 * H + 2 * (H * Z + Z) + Z * T + T  # resident params
                 + bt * Z + 2 * bt * T + 128                    # outputs
                 + bt * H)                                      # accumulator scratch
    mean, pre, p, kld_parts = pl.pallas_call(
        functools.partial(_encoder_kernel, B, bt),
        out_shape=enc_out_shape,
        grid_spec=pltpu.PrefetchScalarGridSpec(
            num_scalar_prefetch=0,
            grid=(nb, nv),
            in_specs=enc_in_specs,
            out_specs=enc_out_specs,
            scratch_shapes=[pltpu.VMEM((bt, H), jnp.float32)],
        ),
        compiler_params=pltpu.CompilerParams(
            dimension_semantics=("parallel", "arbitrary"),
            vmem_limit_bytes=_vmem_limit(enc_words, vmem_cap)),
    )(x_p,
      w1, params["b1"], params["w2"], params["b2"],
      params["wm"], params["bm"], params["wl"], params["bl"],
      params["wg"], params["bg"])

    # ---- decoder pallas_call ----
    if beta_resident:
        beta_spec = pl.BlockSpec((nv, T, v_tile), lambda i, v: (0, 0, 0))
    else:
        beta_spec = pl.BlockSpec((1, T, v_tile), lambda i, v: (v, 0, 0))
    dec_in_specs = [
        pl.BlockSpec((bt, v_tile), lambda i, v: (i, v)),     # x
        pl.BlockSpec((bt, T), lambda i, v: (i, 0)),          # p
        beta_spec,                                           # beta
    ]
    dec_out_specs = (
        pl.BlockSpec((bt, v_tile), lambda i, v: (i, v)),     # recon
        pl.BlockSpec((1, 1, 128), lambda i, v: (i, 0, 0)),   # NL partial (lane dense)
    )
    dec_out_shape = (
        jax.ShapeDtypeStruct((b_pad, V), jnp.float32),
        jax.ShapeDtypeStruct((nb, 1, 128), jnp.float32),
    )
    dec_words = (2 * bt * v_tile + bt * T
                 + (T * V if beta_resident else T * v_tile)
                 + 128 + bt)
    recon, nl_parts = pl.pallas_call(
        functools.partial(_decoder_kernel, B, bt, beta_resident),
        out_shape=dec_out_shape,
        grid_spec=pltpu.PrefetchScalarGridSpec(
            num_scalar_prefetch=0,
            grid=(nb, nv),
            in_specs=dec_in_specs,
            out_specs=dec_out_specs,
            scratch_shapes=[pltpu.VMEM((bt, 1), jnp.float32)],
        ),
        compiler_params=pltpu.CompilerParams(
            dimension_semantics=("parallel", "arbitrary"),
            vmem_limit_bytes=_vmem_limit(dec_words, vmem_cap)),
    )(x_p, p, beta)

    # ---- reduce per-tile partial sums with the TRUE global batch size ----
    nl_total = jnp.sum(nl_parts[:, 0, 0])
    kld_total = jnp.sum(kld_parts[:, 0, 0])
    inv_b = jnp.float32(1.0 / B)
    nl_mean = nl_total * inv_b
    kld_mean = kld_total * inv_b
    loss_mean = (nl_total + kld_total) * inv_b

    return (mean[:B], pre[:B], p[:B], recon[:B], (loss_mean, nl_mean, kld_mean))


# ----------------------------------------------------------------------------
# params / reference
# ----------------------------------------------------------------------------
def init_params(key, net_arch):
    """Deterministic synthetic init (shapes match the torch module's __init__)."""
    V = net_arch["num_input"]
    H = net_arch["n_hidden"]
    Z = net_arch["vi_hidden"]
    T = net_arch["num_topic"]
    E = net_arch["embedding_size"]

    ks = jax.random.split(key, 12)

    def lin(kw, kb, fan_in, fan_out):
        bound = 1.0 / math.sqrt(fan_in)
        w = jax.random.uniform(kw, (fan_in, fan_out), jnp.float32, -bound, bound)
        b = jax.random.uniform(kb, (1, fan_out), jnp.float32, -bound, bound)
        return w, b

    w1, b1 = lin(ks[0], ks[1], V, H)
    w2, b2 = lin(ks[2], ks[3], H, H)
    wm, bm = lin(ks[4], ks[5], H, Z)
    wl, bl = lin(ks[6], ks[7], H, Z)
    wg, bg = lin(ks[8], ks[9], Z, T)

    std = 1.0 / math.sqrt(net_arch["init_mult"] * (V + T))
    tv = std * jax.random.normal(ks[10], (T, E), jnp.float32)   # topic_vectors
    wv = std * jax.random.normal(ks[11], (E, V), jnp.float32)   # word_vectors

    return dict(w1=w1, b1=b1, w2=w2, b2=b2, wm=wm, bm=bm,
                wl=wl, bl=bl, wg=wg, bg=bg, tv=tv, wv=wv)


def reference_forward(x, params, vi_hidden):
    """Pure-JAX reference of the eval-mode torch forward (for correctness check)."""
    mm = lambda a, b: jnp.dot(a, b, precision=jax.lax.Precision.HIGHEST)
    h1 = jnp.tanh(mm(x, params["w1"]) + params["b1"])
    h2 = jnp.tanh(mm(h1, params["w2"]) + params["b2"])
    mean = mm(h2, params["wm"]) + params["bm"]
    logvar = mm(h2, params["wl"]) + params["bl"]
    var = jnp.exp(logvar)
    pre = mm(mean, params["wg"]) + params["bg"]
    p = jax.nn.softmax(pre, axis=1)
    beta = jax.nn.softmax(mm(params["tv"], params["wv"]), axis=1)
    recon = mm(p, beta)
    NL = -(x * jnp.log(recon + 1e-10)).sum(1)
    KLD = 0.5 * ((var + mean * mean - logvar).sum(1) - vi_hidden)
    loss = NL + KLD
    return mean, pre, p, recon, (loss.mean(), NL.mean(), KLD.mean())


if __name__ == "__main__":
    net_arch = dict(num_input=256, n_hidden=128, vi_hidden=64, num_topic=16,
                    embedding_size=64, init_mult=1.0, reg_lambda=0.1)
    B = 20  # deliberately not a multiple of the batch tile -> exercises the row mask

    key = jax.random.PRNGKey(0)
    k_x, k_p = jax.random.split(key)
    # doc_freq_vecs: non-negative word-frequency style input
    x = jax.random.uniform(k_x, (B, net_arch["num_input"]), jnp.float32, 0.0, 1.0)
    params = init_params(k_p, net_arch)
    ref = reference_forward(x, params, net_arch["vi_hidden"])

    # f32 path, small tiles: grid (3, 2) -> exercises batch padding/masking, the
    # vocab-axis accumulation, the V-tiled beta, and the resident-beta decoder.
    out = gsm_forward(x, params, net_arch["vi_hidden"], batch_tile=8, v_tile=128)
    out = jax.block_until_ready(out)
    mean, pre, p, recon, (loss_m, nl_m, kld_m) = out
    for a, b in zip((mean, pre, p, recon, loss_m, nl_m, kld_m), (*ref[:4], *ref[4])):
        assert jnp.allclose(jnp.asarray(a), jnp.asarray(b), atol=1e-3, rtol=1e-3)

    # bf16-streamed w1 (bandwidth optimization), default tiling (bt=16, v_tile=V):
    # looser accuracy budget for the quantized weight stream.
    out_bf = gsm_forward(x, params, net_arch["vi_hidden"],
                         w1_stream_dtype=jnp.bfloat16)
    out_bf = jax.block_until_ready(out_bf)
    mean_b, pre_b, p_b, recon_b, (loss_b, nl_b, kld_b) = out_bf
    for a, b in zip((mean_b, pre_b, p_b, recon_b, loss_b, nl_b, kld_b),
                    (*ref[:4], *ref[4])):
        assert jnp.allclose(jnp.asarray(a), jnp.asarray(b), atol=2e-2, rtol=2e-2)

    print("KERNEL_OK")
</pallas_src>

<mosaic_0001>
module attributes {stable_mosaic.version = 11 : i64} {
  func.func @_beta_stats_kernel(%arg0: i32, %arg1: memref<16x64xf32, #tpu.memory_space<vmem>>, %arg2: memref<64x128xf32, #tpu.memory_space<vmem>>, %arg3: memref<16x1xf32, #tpu.memory_space<vmem>>, %arg4: memref<16x1xf32, #tpu.memory_space<vmem>>, %arg5: memref<16x1xf32, #tpu.memory_space<vmem>>, %arg6: memref<16x1xf32, #tpu.memory_space<vmem>>) attributes {dimension_semantics = [#tpu.dimension_semantics<arbitrary>], iteration_bounds = array<i64: 2>, scalar_prefetch = 0 : i64, scratch_operands = 2 : i64, tpu.core_type = #tpu.core_type<tc>, window_params = [{pipeline_mode = #tpu.pipeline_mode<synchronous>, transform_indices = @transform_0, window_bounds = array<i64: 16, 64>}, {transform_indices = @transform_1, window_bounds = array<i64: 64, 128>}, {pipeline_mode = #tpu.pipeline_mode<synchronous>, transform_indices = @transform_2, window_bounds = array<i64: 16, 1>}, {pipeline_mode = #tpu.pipeline_mode<synchronous>, transform_indices = @transform_3, window_bounds = array<i64: 16, 1>}]} {
    %c0_i32 = arith.constant 0 : i32
    %0 = arith.cmpi eq, %arg0, %c0_i32 : i32
    %1 = arith.extui %0 : i1 to i32
    %c0_i32_0 = arith.constant 0 : i32
    %2 = arith.cmpi ne, %1, %c0_i32_0 : i32
    scf.if %2 {
      %cst_17 = arith.constant 0xFF800000 : f32
      %26 = vector.broadcast %cst_17 : f32 to vector<16x1xf32>
      %c0_18 = arith.constant 0 : index
      %c0_19 = arith.constant 0 : index
      %27 = vector.load %arg5[%c0_18, %c0_19] : memref<16x1xf32, #tpu.memory_space<vmem>>, vector<16x1xf32>
      tpu.vector_store %arg5[%c0_18, %c0_19], %26 {strides = array<i32>} : memref<16x1xf32, #tpu.memory_space<vmem>>, vector<16x1xf32>,
      %cst_20 = arith.constant 0.000000e+00 : f32
      %28 = vector.broadcast %cst_20 : f32 to vector<16x1xf32>
      %c0_21 = arith.constant 0 : index
      %c0_22 = arith.constant 0 : index
      %29 = vector.load %arg6[%c0_21, %c0_22] : memref<16x1xf32, #tpu.memory_space<vmem>>, vector<16x1xf32>
      tpu.vector_store %arg6[%c0_21, %c0_22], %28 {strides = array<i32>} : memref<16x1xf32, #tpu.memory_space<vmem>>, vector<16x1xf32>,
    } else {
    }
    %c0 = arith.constant 0 : index
    %c0_1 = arith.constant 0 : index
    %3 = vector.load %arg1[%c0, %c0_1] : memref<16x64xf32, #tpu.memory_space<vmem>>, vector<16x64xf32>
    %c0_2 = arith.constant 0 : index
    %c0_3 = arith.constant 0 : index
    %4 = vector.load %arg2[%c0_2, %c0_3] : memref<64x128xf32, #tpu.memory_space<vmem>>, vector<64x128xf32>
    %cst = arith.constant dense<0.000000e+00> : vector<16x128xf32>
    %5 = tpu.matmul %3, %4, %cst {dimension_numbers = #tpu.dot_dimension_numbers<[1], [0], [0], [1], [0, 0, 1, 1], [], []>} : vector<16x64xf32>, vector<64x128xf32>, vector<16x128xf32> -> vector<16x128xf32>
    %c0_4 = arith.constant 0 : index
    %c0_5 = arith.constant 0 : index
    %6 = vector.load %arg5[%c0_4, %c0_5] : memref<16x1xf32, #tpu.memory_space<vmem>>, vector<16x1xf32>
    %cst_6 = arith.constant dense<0xFF800000> : vector<16xf32>
    %7 = vector.multi_reduction <maximumf>, %5, %cst_6 [1] : vector<16x128xf32> to vector<16xf32>
    %8 = vector.shape_cast %7 : vector<16xf32> to vector<16x1xf32>
    %9 = arith.maximumf %6, %8 : vector<16x1xf32>
    %c0_7 = arith.constant 0 : index
    %c0_8 = arith.constant 0 : index
    %10 = vector.load %arg6[%c0_7, %c0_8] : memref<16x1xf32, #tpu.memory_space<vmem>>, vector<16x1xf32>
    %c0_9 = arith.constant 0 : index
    %c0_10 = arith.constant 0 : index
    %11 = vector.load %arg5[%c0_9, %c0_10] : memref<16x1xf32, #tpu.memory_space<vmem>>, vector<16x1xf32>
    %12 = arith.subf %11, %9 : vector<16x1xf32>
    %13 = math.exp %12 : vector<16x1xf32>
    %14 = arith.mulf %10, %13 : vector<16x1xf32>
    %15 = vector.broadcast %9 : vector<16x1xf32> to vector<16x128xf32>
    %16 = arith.subf %5, %15 : vector<16x128xf32>
    %17 = math.exp %16 : vector<16x128xf32>
    %cst_11 = arith.constant dense<0.000000e+00> : vector<16xf32>
    %18 = vector.multi_reduction <add>, %17, %cst_11 [1] : vector<16x128xf32> to vector<16xf32>
    %19 = vector.shape_cast %18 : vector<16xf32> to vector<16x1xf32>
    %20 = arith.addf %14, %19 : vector<16x1xf32>
    %c0_12 = arith.constant 0 : index
    %c0_13 = arith.constant 0 : index
    %21 = vector.load %arg6[%c0_12, %c0_13] : memref<16x1xf32, #tpu.memory_space<vmem>>, vector<16x1xf32>
    tpu.vector_store %arg6[%c0_12, %c0_13], %20 {strides = array<i32>} : memref<16x1xf32, #tpu.memory_space<vmem>>, vector<16x1xf32>,
    %c0_14 = arith.constant 0 : index
    %c0_15 = arith.constant 0 : index
    %22 = vector.load %arg5[%c0_14, %c0_15] : memref<16x1xf32, #tpu.memory_space<vmem>>, vector<16x1xf32>
    tpu.vector_store %arg5[%c0_14, %c0_15], %9 {strides = array<i32>} : memref<16x1xf32, #tpu.memory_space<vmem>>, vector<16x1xf32>,
    %c1_i32 = arith.constant 1 : i32
    %23 = arith.cmpi eq, %arg0, %c1_i32 : i32
    %24 = arith.extui %23 : i1 to i32
    %c0_i32_16 = arith.constant 0 : i32
    %25 = arith.cmpi ne, %24, %c0_i32_16 : i32
    scf.if %25 {
      %c0_17 = arith.constant 0 : index
      %c0_18 = arith.constant 0 : index
      %26 = vector.load %arg5[%c0_17, %c0_18] : memref<16x1xf32, #tpu.memory_space<vmem>>, vector<16x1xf32>
      %c0_19 = arith.constant 0 : index
      %c0_20 = arith.constant 0 : index
      %27 = vector.load %arg3[%c0_19, %c0_20] : memref<16x1xf32, #tpu.memory_space<vmem>>, vector<16x1xf32>
      tpu.vector_store %arg3[%c0_19, %c0_20], %26 {strides = array<i32>} : memref<16x1xf32, #tpu.memory_space<vmem>>, vector<16x1xf32>,
      %c0_21 = arith.constant 0 : index
      %c0_22 = arith.constant 0 : index
      %28 = vector.load %arg6[%c0_21, %c0_22] : memref<16x1xf32, #tpu.memory_space<vmem>>, vector<16x1xf32>
      %c0_23 = arith.constant 0 : index
      %c0_24 = arith.constant 0 : index
      %29 = vector.load %arg4[%c0_23, %c0_24] : memref<16x1xf32, #tpu.memory_space<vmem>>, vector<16x1xf32>
      tpu.vector_store %arg4[%c0_23, %c0_24], %28 {strides = array<i32>} : memref<16x1xf32, #tpu.memory_space<vmem>>, vector<16x1xf32>,
    } else {
    }
    return
  }
  func.func @transform_0(%arg0: i32) -> (i32, i32) {
    %c0_i32 = arith.constant 0 : i32
    %c0_i32_0 = arith.constant 0 : i32
    %c0_i32_1 = arith.constant 0 : i32
    return %c0_i32, %c0_i32_0 : i32, i32
  }
  func.func @transform_1(%arg0: i32) -> (i32, i32) {
    %c0_i32 = arith.constant 0 : i32
    %c0_i32_0 = arith.constant 0 : i32
    return %c0_i32, %arg0 : i32, i32
  }
  func.func @transform_2(%arg0: i32) -> (i32, i32) {
    %c0_i32 = arith.constant 0 : i32
    %c0_i32_0 = arith.constant 0 : i32
    %c0_i32_1 = arith.constant 0 : i32
    return %c0_i32, %c0_i32_0 : i32, i32
  }
  func.func @transform_3(%arg0: i32) -> (i32, i32) {
    %c0_i32 = arith.constant 0 : i32
    %c0_i32_0 = arith.constant 0 : i32
    %c0_i32_1 = arith.constant 0 : i32
    return %c0_i32, %c0_i32_0 : i32, i32
  }
}

</mosaic_0001>

<bundles_post_ra>
// kernel: tpu_custom_call.1
= control target key start
LH: loop header
LB: loop body
LE: loop exit
PB: predicated region body
PF: predicated region fallthrough
CT: control target
= control target key end

     0   :  { %9 = vsyncpa [#allocation5], 0  ;;  %s829_s0 = inlined_call_operand.hbm [shape: f32[16,64], index: 0, kind: input, shape index: {}]   ;;  %s830_s1 = inlined_call_operand.hbm [shape: f32[64,256], index: 1, kind: input, shape index: {}]   ;;  %s831_s2 = inlined_call_operand.vmem [shape: f32[16,1], index: 2, kind: output, shape index: {0}]   ;;  %s832_s3 = inlined_call_operand.vmem [shape: f32[16,1], index: 3, kind: output, shape index: {1}]  }
   0x1   :  { %10 = vsyncpa [#allocation7], 0 }
   0x2   :  { %12 = vsyncpa [#allocation7 + $0x1], 0  ;;  %s655_s12 = smov 0   ;;  %s657_s13 = smov 0  }
   0x3   :  { %s659_s14 = smov 0   ;;  %s661_s15 = smov 0  }
   0x4 LB: > { %s674_s16 = sadd.s32 4294967295, %s625_s15   ;;  %s677_s17 = sadd.s32 1, %s625_s15   ;;  %s625_s15 = sphi %s661_s15, %s851_s15   ;;  %s621_s14 = sphi %s659_s14, %s850_s14   ;;  %s617_s13 = sphi %s657_s13, %s849_s13   ;;  %s613_s12 = sphi %s655_s12, %s848_s12  }
   0x5   : > { %s43_s18 = ssub.s32 %s625_s15, %s677_s17  ;;  %s46_s19 = sadd.s32 1, %s621_s14 }
   0x6   : > { %p44_p0 = scmp.eq.s32.totalorder %s43_s18, 0  ;;  %p53_p1 = scmp.ne.s32.totalorder %s621_s14, %s617_s13 }
   0x7   : > { %p54_p2 = scmp.eq.s32.totalorder %s625_s15, 0  ;;  %p59_p3 = scmp.ne.s32.totalorder %s617_s13, %s613_s12 }
   0x8   : > { %s687_s20 = scalar_select %p44_p0, %s621_s14, %s46_s19  }
   0x9   : > { %p689_p4 = por %p54_p2, %p53_p1  ;;  %p833_p5 = scmp.eq.s32.totalorder %s674_s16, 0 }
   0xa   : > { %p404_p6 = scmp.ge.s32.totalorder %s625_s15, 1  ;;  %p112_p7 = scmp.lt.s32.totalorder %s625_s15, 3 }
   0xb   : > { %p698_p8 = por %p833_p5, %p59_p3  ;;  %s627_s24 = smov [#allocation4]  }
   0xc   : > { %p703_p10 = pnand %p404_p6, %p112_p7  ;;  %s124_s25 = sshll.u32 %s627_s24, 4  ;;  %s125_s25 = int_to_ptr.vmem [resolvable:$true] %s124_s25 }
   0xd   : > { %s838_s22 = scalar_select %p698_p8, 1, 0 }
   0xe   : > { %s839_s23 = scalar_select %p703_p10, 1, 0 }
   0xf   : > { %p469_p11 = pneg %p703_p10  ;;  %p478_p13 = scmp.lt.s32.totalorder %s625_s15, 2 }
  0x10   : > { %s138_s27 = sand.u32 1, %s621_s14   ;;  %s408_s28 = sshll.u32 %s625_s15, 7 }
  0x11   : > { %p711_p12 = pnand %p469_p11, %p833_p5  ;;  %p720_p0 = pnand %p478_p13, %p689_p4 }
  0x12   : > { %s529_s5 = scalar_lea.hbm %s829_s0, 256 }
  0x13   : > { %s841_s29 = scalar_select %p720_p0, 1, 0 }
  0x14   : > { %p530_p1 = scmp.ne.s32.totalorder %s829_s0, %s529_s5  ;;  %p531_p2 = pneg %p711_p12 }
  0x15   : > { %p536_p7 = scmp.lt.u32.totalorder %s529_s5, %s829_s0 }
  0x16   : > { %p532_p3 = pnand %p531_p2, %p530_p1 }
  0x18   : > { %p533_p6 = pneg %p532_p3 }
  0x1a   : > { %p538_p4 = pnand %p536_p7, %p533_p6 }
  0x1c   : > { %541 = shalt.err (!%p538_p4)
}
  0x1d   : > { %s542_s10 = scalar_lea.vmem %s125_s25, 256  ;;  %p550_p5 = scmp.lt.s32.totalorder %s125_s25, %s125_s25 }
  0x1e   : > { %p543_p11 = scmp.ne.s32.totalorder %s125_s25, %s542_s10  ;;  %p551_p8 = scmp.lt.s32.totalorder %s542_s10, %s542_s10 }
  0x20   : > { %p545_p13 = pnand %p543_p11, %p531_p2  ;;  %p552_p10 = por %p551_p8, %p550_p5 }
  0x22   : > { %p546_p9 = pneg %p545_p13 }
  0x24   : > { %p553_p0 = pnand %p552_p10, %p546_p9 }
  0x26   : > { %556 = shalt.err (!%p553_p0)
}
  0x27   : > { %s628_s11 = smov 128   ;;  %s629_s12 = smov 8  }
  0x28   : > { %472 = dma.hbm_to_vmem [thread:$0]  (!%p711_p12), %s829_s0, 256, %s125_s25, [#allocation5], %s628_s11, %s628_s11, %s629_s12  }
  0x29   : > { %s407_s19 = sshll.u32 %s138_s27, 6  ;;  %s746_s30 = scalar_lea.hbm %s830_s1, %s408_s28 }
  0x2a   : > { %s142_s4 = scalar_lea.vmem [#allocation6], %s407_s19  ;;  %s750_s26 = scalar_lea.sflag [#allocation7], %s138_s27 }
  0x2b   : > { %s148_s5 = sshll.u32 %s142_s4, 4  ;;  %s557_s6 = scalar_lea.hbm %s746_s30, 1024  ;;  %s748_s5 = int_to_ptr.vmem [resolvable:$true] %s148_s5 }
  0x2c   : > { %p558_p5 = scmp.ne.s32.totalorder %s746_s30, %s557_s6  ;;  %p842_p8 = scmp.ne.s32.totalorder %s841_s29, 0 }
  0x2d   : > { %s562_s7 = scalar_lea.hbm %s830_s1, 2048  ;;  %p563_p0 = scmp.lt.u32.totalorder %s746_s30, %s830_s1 }
  0x2e   : > { %p559_p9 = pneg %p842_p8  ;;  %p564_p1 = scmp.lt.u32.totalorder %s562_s7, %s557_s6 }
  0x2f   : > { %p566_p3 = scmp.lt.u32.totalorder %s557_s6, %s746_s30 }
  0x30   : > { %p560_p10 = pnand %p559_p9, %p558_p5  ;;  %p565_p2 = por %p564_p1, %p563_p0 }
  0x32   : > { %p561_p12 = pneg %p560_p10  ;;  %p567_p6 = por %p566_p3, %p565_p2 }
  0x34   : > { %p568_p7 = pnand %p567_p6, %p561_p12 }
  0x36   : > { %571 = shalt.err (!%p568_p7)
}
  0x37   : > { %s572_s27 = scalar_lea.vmem %s748_s5, 1024  ;;  %s630_s10 = smov [#allocation6]  }
  0x38   : > { %p573_p4 = scmp.ne.s32.totalorder %s748_s5, %s572_s27  ;;  %s577_s15 = sshll.u32 %s630_s10, 4  ;;  %s578_s15 = int_to_ptr.vmem [resolvable:$false] %s577_s15 }
  0x39   : > { %s579_s18 = scalar_lea.vmem %s578_s15, 2048  ;;  %p580_p5 = scmp.lt.s32.totalorder %s748_s5, %s578_s15 }
  0x3a   : > { %p575_p11 = pnand %p573_p4, %p559_p9  ;;  %p581_p10 = scmp.lt.s32.totalorder %s579_s18, %s572_s27 }
  0x3c   : > { %p576_p13 = pneg %p575_p11  ;;  %p582_p0 = por %p581_p10, %p580_p5 }
  0x3e   : > { %p583_p1 = pnand %p582_p0, %p576_p13 }
  0x40   : > { %586 = shalt.err (!%p583_p1)
}
  0x41   : > { %s631_s19 = smov 256   ;;  %p843_p9 = scmp.ne.s32.totalorder %s839_s23, 0 }
  0x42   : > { %476 = dma.hbm_to_vmem [thread:$0]  (!%p842_p8), %s746_s30, 1024, %s748_s5, %s750_s26, %s631_s19, %s628_s11, %s629_s12  }
  0x43   : > { %160 = sbr.rel (%p843_p9) target bundleno = 764 (0x2fc), region = 28  ;;  %p844_p12 = scmp.eq.s32.totalorder (!%p843_p9), %s674_s16, 0 }
  0x4a   : > { %604 = dma.done.wait (%p844_p12), [#allocation5], 256   ;;  %p845_p2 = pmov %p844_p12 }
  0x4b   : > { %s166_s21 = sand.u32 1, %s617_s13   ;;  %p846_p3 = scmp.ne.s32.totalorder %s838_s22, 0 }
  0x4c   : > { %606 = vsyncadd (%p845_p2), [#allocation5], 4294967040  ;;  %s411_s24 = sshll.u32 %s166_s21, 6  ;;  %s167_s29 = scalar_lea.sflag [#allocation7], %s166_s21 }
  0x4d   : > { %s170_s4 = scalar_lea.vmem [#allocation6], %s411_s24 }
  0x4e   : > { %608 = dma.done.wait (%p846_p3), %s167_s29, 1024  }
  0x4f   : > { %610 = vsyncadd (%p846_p3), %s167_s29, 4294966272  ;;  %p847_p8 = scmp.ne.s32.totalorder %s674_s16, 0 }
  0x50   : > { %vm192_vm0 = vcmask (!%p847_p8), 7168   ;;  %v632_v0 = vmov (!%p847_p8), -inf   ;;  %v633_v1 = vmov (!%p847_p8), 0.0  }
  0x51   : > { %191 = sbr.rel (%p847_p8) target bundleno = 88 (0x58), region = 40  ;;  %193 = vst.msk [vmem:[#allocation2] sm:$0xff] (!%p847_p8), %vm192_vm0, %v632_v0  ;;  %194 = vst.msk [vmem:[#allocation2 + $0x8] sm:$0xff] (!%p847_p8), %vm192_vm0, %v632_v0 }
  0x52   : > { %195 = vst.msk [vmem:[#allocation3] sm:$0xff] (!%p847_p8), %vm192_vm0, %v633_v1  ;;  %196 = vst.msk [vmem:[#allocation3 + $0x8] sm:$0xff] (!%p847_p8), %vm192_vm0, %v633_v1 }
  0x58 PF: > { %v199_v2 = vld [vmem:[%s170_s4] sm:$0xff]  ;;  %v200_v3 = vld [vmem:[%s170_s4 + $0x8] sm:$0xff]  ;;  %v201_v4 = vld [vmem:[%s170_s4 + $0x10] sm:$0xff]  ;;  %vm207_vm1 = vcmask 523264   ;;  %v634_v18 = vmov 0   ;;  %vm329_vm2 = vcmask 7168  }
  0x59   : > { %v447_v5 = vpack.c.bf16 %v200_v3, %v199_v2  ;;  %v202_v6 = vld [vmem:[%s170_s4 + $0x18] sm:$0xff]  ;;  %v203_v8 = vld [vmem:[%s170_s4 + $0x20] sm:$0xff]  ;;  %v204_v9 = vld [vmem:[%s170_s4 + $0x28] sm:$0xff]  ;;  %519 = vset.pattern.permute.xlu1 %v634_v18  ;;  %520 = vset.pattern.permute.xlu0 %v634_v18  ;;  %p415_p6 = scmp.ne.s32.totalorder %s674_s16, 1 }
  0x5a   : > { %v451_v7 = vpack.c.bf16 %v202_v6, %v201_v4  ;;  %v197_v10 = vld [vmem:[#allocation4] sm:$0xff]  ;;  %v455_v11 = vpack.c.bf16 %v204_v9, %v203_v8  ;;  %v206_v13 = vld [vmem:[%s170_s4 + $0x38] sm:$0xff]  ;;  %v297_v38 = vld [vmem:[#allocation3] sm:$0xff] }
  0x5b   : > { %448 = vmatprep.subr.bf16.mxu0 %v447_v5  ;;  %444 = vmatprep.mubr.msk.f32.mxu0 %vm207_vm1, %v197_v10  ;;  %v205_v12 = vld [vmem:[%s170_s4 + $0x30] sm:$0xff]  ;;  %v198_v15 = vld [vmem:[#allocation4 + $0x8] sm:$0xff]  ;;  %v298_v42 = vld [vmem:[#allocation3 + $0x8] sm:$0xff] }
  0x5c   : > { %450 = vmatpush3.bf16.msra.mxu0 %v447_v5  ;;  %v459_v14 = vpack.c.bf16 %v206_v13, %v205_v12  ;;  %v289_v19 = vld [vmem:[#allocation2] sm:$0xff]  ;;  %v290_v22 = vld [vmem:[#allocation2 + $0x8] sm:$0xff] }
  0x5d   : > { %452 = vmatprep.subr.bf16.mxu0 %v451_v7 }
  0x60   : > { %454 = vmatpush3.bf16.msra.mxu0 %v451_v7 }
  0x61   : > { %456 = vmatprep.subr.bf16.mxu0 %v455_v11 }
  0x64   : > { %458 = vmatpush3.bf16.msra.mxu0 %v455_v11 }
  0x65   : > { %460 = vmatprep.subr.bf16.mxu0 %v459_v14 }
  0x68   : > { %462 = vmatpush3.bf16.msra.mxu0 %v459_v14 }
  0x6b   : > { %445 = vmatmul.mubr.msk.f32.vlgmr.msra.gmra.mrb[0].mxu0 %vm207_vm1, %v198_v15 }
 0x13e   : > { %v446_v16 = vpop.f32.mrb[0].mxu0 }
 0x13f   : > { %v280_v17 = vpop.f32.mrb[1].mxu0 }
 0x140   : > { %291 = vmax.xlane.f32.xlu0 %v280_v17 }
 0x144   : > { %293 = vmax.xlane.f32.xlu0 %v446_v16 }
 0x1cd   : > { %v292_v20 = vpop.xlane.xlu0 %291 }
 0x1ce   : > { %v295_v21 = vmax.f32 %v289_v19, %v292_v20 }
 0x1d0   : > { %v299_v23 = vsub.f32 %v289_v19, %v295_v21  ;;  %332 = vst.msk [vmem:[#allocation2] sm:$0xff] %vm329_vm2, %v295_v21  ;;  %309 = vperm.xlu1 %519, %v295_v21  }
 0x1d1   : > { %v294_v24 = vpop.xlane.xlu0 %293 }
 0x1d2   : > { %v296_v25 = vmax.f32 %v290_v22, %v294_v24  ;;  %v301_v35 = vmul.f32 1.442695, %v299_v23 }
 0x1d4   : > { %v300_v26 = vsub.f32 %v290_v22, %v296_v25  ;;  %333 = vst.msk [vmem:[#allocation2 + $0x8] sm:$0xff] %vm329_vm2, %v296_v25  ;;  %314 = vperm.xlu1 %519, %v296_v25  }
 0x1d6   : > { %v303_v36 = vmul.f32 1.442695, %v300_v26 }
 0x1d7   : > { %v338_v47 = vld [vmem:[#allocation2] sm:$0xff] (!%p415_p6) }
 0x1d8   : > { %340 = vst.msk [vmem:[%s831_s2] sm:$0xff] (!%p415_p6), %vm329_vm2, %v338_v47 }
 0x1db   : > { %v339_v48 = vld [vmem:[#allocation2 + $0x8] sm:$0xff] (!%p415_p6) }
 0x1dc   : > { %341 = vst.msk [vmem:[%s831_s2 + $0x8] sm:$0xff] (!%p415_p6), %vm329_vm2, %v339_v48 }
 0x24f   : > { %v310_v27 = vpop.permute.xlu1 %309 }
 0x250   : > { %v317_v28 = vsub.f32 %v280_v17, %v310_v27 }
 0x252   : > { %v319_v29 = vmul.f32 1.442695, %v317_v28 }
 0x253   : > { %v315_v30 = vpop.permute.xlu1 %314 }
 0x254   : > { %521 = vpow2.f32 %v319_v29  ;;  %v318_v31 = vsub.f32 %v446_v16, %v315_v30 }
 0x256   : > { %v321_v32 = vmul.f32 1.442695, %v318_v31 }
 0x258   : > { %523 = vpow2.f32 %v321_v32 }
 0x259   : > { %525 = vpow2.f32 %v301_v35 }
 0x25a   : > { %527 = vpow2.f32 %v303_v36 }
 0x25e   : > { %v522_v33 = vpop.eup %521 }
 0x25f   : > { %323 = vadd.xlane.f32.xlu0 %v522_v33 }
 0x262   : > { %v524_v34 = vpop.eup %523 }
 0x263   : > { %325 = vadd.xlane.f32.xlu1 %v524_v34  ;;  %v526_v37 = vpop.eup %525 }
 0x264   : > { %v305_v39 = vmul.f32 %v526_v37, %v297_v38  ;;  %v528_v40 = vpop.eup %527 }
 0x265   : > { %v306_v44 = vmul.f32 %v528_v40, %v298_v42 }
 0x2ec   : > { %v324_v41 = vpop.xlane.xlu0 %323 }
 0x2ed   : > { %v327_v43 = vadd.f32 %v324_v41, %v305_v39  ;;  %337 = sbr.rel (%p415_p6) target bundleno = 764 (0x2fc), region = 44 }
 0x2ef   : > { %330 = vst.msk [vmem:[#allocation3] sm:$0xff] %vm329_vm2, %v327_v43 }
 0x2f0   : > { %v326_v45 = vpop.xlane.xlu1 %325 }
 0x2f1   : > { %v328_v46 = vadd.f32 %v326_v45, %v306_v44 }
 0x2f3   : > { %331 = vst.msk [vmem:[#allocation3 + $0x8] sm:$0xff] %vm329_vm2, %v328_v46 }
 0x2f6   : > { %v342_v49 = vld [vmem:[#allocation3] sm:$0xff] }
 0x2f7   : > { %344 = vst.msk [vmem:[%s832_s3] sm:$0xff] %vm329_vm2, %v342_v49 }
 0x2fa   : > { %v343_v50 = vld [vmem:[#allocation3 + $0x8] sm:$0xff] }
 0x2fb   : > { %345 = vst.msk [vmem:[%s832_s3 + $0x8] sm:$0xff] %vm329_vm2, %v343_v50 }
 0x2fc PF: > { %p15_p7 = scmp.ge.s32.totalorder %s677_s17, 4   ;;  %s848_s12 = smov %s617_s13 }
 0x2fd   : > { %s849_s13 = smov %s621_s14  ;;  %s850_s14 = smov %s687_s20 }
 0x2fe   : > { %s851_s15 = smov %s677_s17  ;;  %17 = sbr.rel (!%p15_p7) target bundleno = 4 (0x4), region = 85 }
 0x305   :  { %363 = vsyncpa [#allocation5], 1 }
 0x306   :  { %365 = vsyncpa [#allocation5 + $0x1], 1 }
 0x307   :  { %366 = vsyncpa [#allocation7], 1 }
 0x308   :  { %368 = vsyncpa [#allocation7 + $0x1], 1 }

</bundles_post_ra>
